<compile_context>
chip_gen: v5e
topology: v5e:2x2
jax: 0.10.0
libtpu: 0.0.40
codegen_flags: <defaults>
</compile_context>

<pallas_src>
import functools
import math

import numpy as np
import jax
import jax.numpy as jnp
from jax import lax
from jax.experimental import pallas as pl
from jax.experimental.pallas import tpu as pltpu

WINDOW_SIZE = 11
SIGMA = 1.5
C1 = 0.01 ** 2
C2 = 0.03 ** 2

# f32 elements per input per grid-step block.  Strip-wise processing keeps
# in-kernel temporaries strip-sized, so VMEM per step is ~2 inputs x 2 buffers
# x 512 KiB ~= 2 MiB -- well inside every generation's default scoped limit.
_TARGET_BLOCK_ELEMS = 128 * 1024
_MAX_STRIP_LANES = 512          # target strip width (lanes)
_STRIP_VREG_BUDGET = 40         # rough live-vreg cap for the tap loop
_MAX_STATIC_STRIPS = 8          # unroll strip loop if this small, else fori_loop


def _round_up(v, mult):
    return -(-v // mult) * mult


def _gaussian_taps(size: int, sigma: float) -> np.ndarray:
    coords = np.arange(size, dtype=np.float64) - (size // 2)
    g = np.exp(-(coords ** 2) / (2.0 * sigma ** 2))
    return (g / g.sum()).astype(np.float32)


def _band_matrix(dim: int, taps: np.ndarray) -> np.ndarray:
    """A[i, i+d] = taps[d+pad]: zero-padded 'same' cross-correlation along rows."""
    k = taps.shape[0]
    pad = k // 2
    a = np.zeros((dim, dim), dtype=np.float32)
    rows = np.arange(dim)
    for kk in range(k):
        d = kk - pad
        cols = rows + d
        m = (cols >= 0) & (cols < dim)
        a[rows[m], cols[m]] = taps[kk]
    return a


def _w_coeff_table(w: int, sw: int, taps: np.ndarray) -> np.ndarray:
    """(K_pad, SW) table: row `tap`, lane l = taps[tap] if the source pixel
    (l % W) + (tap - pad) lies inside the image, else 0 (zero padding).
    Periodic with period W, so one strip-wide table serves every strip/block."""
    k = taps.shape[0]
    pad = k // 2
    k_pad = _round_up(k, 8)
    tbl = np.zeros((k_pad, sw), dtype=np.float32)
    wpos = np.arange(sw, dtype=np.int64) % w
    for tap in range(k):
        d = tap - pad
        src = wpos + d
        tbl[tap] = np.where((src >= 0) & (src < w), np.float32(taps[tap]), np.float32(0.0))
    return tbl


def _make_ssim_kernel(h, sw, n_strips, k_taps):
    pad = k_taps // 2

    def strip_partial(a_band, coeff_rows, start, p_ref, t_ref, valid_ref):
        # Load the strip (upcast narrow inputs to f32 after the DMA'd load).
        p = p_ref[:, pl.ds(start, sw)].astype(jnp.float32)          # (H, SW)
        t = t_ref[:, pl.ds(start, sw)].astype(jnp.float32)          # (H, SW)
        vld = valid_ref[:, pl.ds(start, sw)]                        # (1, SW)

        # ---- H-direction 'same' conv: ONE fused band matmul (MXU, f32) ------
        slab = jnp.concatenate([p, t, p * p, t * t, p * t], axis=1)  # (H, 5*SW)
        conv = jnp.dot(a_band, slab, preferred_element_type=jnp.float32)
        streams = [conv[:, j * sw:(j + 1) * sw] for j in range(5)]   # 5 x (H, SW)

        # ---- W-direction 'same' conv: K-tap roll & accumulate, in vregs -----
        acc = [None] * 5
        for tap in range(k_taps):
            d = tap - pad
            shift = (-d) % sw        # jnp.roll convention: rolled[l] = x[l + d]
            coeff = coeff_rows[tap]                                  # (1, SW)
            for j in range(5):
                src = streams[j] if shift == 0 else pltpu.roll(streams[j], shift, 1)
                term = coeff * src
                acc[j] = term if acc[j] is None else acc[j] + term

        mu1, mu2, e11, e22, e12 = acc
        mu1_sq = mu1 * mu1
        mu2_sq = mu2 * mu2
        mu1_mu2 = mu1 * mu2
        s1 = e11 - mu1_sq
        s2 = e22 - mu2_sq
        s12 = e12 - mu1_mu2
        num = (2.0 * mu1_mu2 + C1) * (2.0 * s12 + C2)
        den = (mu1_sq + mu2_sq + C1) * (s1 + s2 + C2)
        ssim_map = num * pl.reciprocal(den, approx=True)             # EUP divide

        masked = ssim_map * vld                     # zero padded (beyond-batch) images

        # reduce the strip to a (1, 128) partial
        r = masked[:, 0:128]
        for ci in range(1, sw // 128):
            r = r + masked[:, ci * 128:(ci + 1) * 128]
        return jnp.sum(r, axis=0, keepdims=True)                     # (1, 128)

    def kernel(a_ref, ctab_ref, valid_ref, p_ref, t_ref, o_ref):
        a_band = a_ref[...]                      # (H, H) Gaussian band matrix
        ctab = ctab_ref[...]                     # (K_pad, SW) static W-tap coeffs
        coeff_rows = [ctab[tap:tap + 1, :] for tap in range(k_taps)]

        if n_strips <= _MAX_STATIC_STRIPS:
            total = strip_partial(a_band, coeff_rows, 0, p_ref, t_ref, valid_ref)
            for s in range(1, n_strips):
                total = total + strip_partial(a_band, coeff_rows, s * sw,
                                              p_ref, t_ref, valid_ref)
        else:
            def body(s, carry):
                start = pl.multiple_of(s * sw, 128)
                return carry + strip_partial(a_band, coeff_rows, start,
                                             p_ref, t_ref, valid_ref)
            total = lax.fori_loop(0, n_strips, body,
                                  jnp.zeros((1, 128), jnp.float32))

        # lane-dense per-block partial tile (no carried accumulator)
        o_ref[0] = jnp.concatenate([total, jnp.zeros((7, 128), jnp.float32)], axis=0)

    return kernel


@functools.partial(jax.jit, static_argnames=("window_size", "sigma"))
def ssim_loss(pred, target, window_size: int = WINDOW_SIZE, sigma: float = SIGMA):
    if pred.ndim == 5:
        b, t, c, h, w = pred.shape
        pred = pred.reshape(b * t, c, h, w)
        target = target.reshape(b * t, c, h, w)

    n, c, h, w = pred.shape
    # The PyTorch module's (1,1,K,K)/groups=1 conv2d implies c == 1; extra
    # channels here are treated as independent grayscale images (documented
    # divergence: the PyTorch module would raise for c > 1).
    m = n * c

    # keep bf16/f16 narrow through relayout + DMA; upcast to f32 in the kernel
    if pred.dtype in (jnp.float32, jnp.bfloat16, jnp.float16):
        io_dtype = pred.dtype
    else:
        io_dtype = jnp.float32
    x = pred.reshape(m, h, w).astype(io_dtype)
    y = target.reshape(m, h, w).astype(io_dtype)

    taps = _gaussian_taps(window_size, sigma)
    a_band = jnp.asarray(_band_matrix(h, taps))              # (H, H) f32

    # ---- images-per-block B: lane dim B*W must be a multiple of 128 ----------
    q = 128 // math.gcd(w, 128)                  # min B granularity for lane alignment
    b_img = _round_up(max(1, _TARGET_BLOCK_ELEMS // (h * w)), q)
    if m * h * w > _TARGET_BLOCK_ELEMS:
        # v7x megacore: keep >= 2 (preferably >= 4) grid blocks when splittable
        for want in (4, 2):
            b_split = ((m - 1) // (want - 1)) // q * q
            if b_split >= q:
                b_img = min(b_img, b_split)
                break
    b_img = min(b_img, _round_up(m, q))          # don't pad far past the batch
    b_img = max(b_img, q)
    m_pad = _round_up(m, b_img)
    g_blocks = m_pad // b_img
    lanes = b_img * w

    if m_pad != m:
        x = jnp.pad(x, ((0, m_pad - m), (0, 0), (0, 0)))
        y = jnp.pad(y, ((0, m_pad - m), (0, 0), (0, 0)))

    # lane-dense layout: (M, H, W) -> (H, M*W); image i occupies lanes [i*W,(i+1)*W)
    x2d = jnp.transpose(x, (1, 0, 2)).reshape(h, m_pad * w)
    y2d = jnp.transpose(y, (1, 0, 2)).reshape(h, m_pad * w)

    # ---- strip width: multiple of both W (image-aligned rolls) and 128 -------
    sw = q * w                                   # = lcm(W, 128)
    def _live_vregs(hh, ss):
        return 12 * (_round_up(hh, 8) // 8) * (ss // 128)
    while (sw * 2 <= _MAX_STRIP_LANES and lanes % (sw * 2) == 0
           and _live_vregs(h, sw * 2) <= _STRIP_VREG_BUDGET):
        sw *= 2
    sw = min(sw, lanes)
    assert lanes % sw == 0 and sw % w == 0 and sw % 128 == 0
    n_strips = lanes // sw

    # static per-lane W-tap coefficient table and per-lane validity mask
    ctab = jnp.asarray(_w_coeff_table(w, sw, taps))                     # (K_pad, SW)
    valid = jnp.asarray(
        ((np.arange(m_pad * w, dtype=np.int64) // w) < m
         ).astype(np.float32)[None, :])                                  # (1, M_pad*W)

    kernel = _make_ssim_kernel(h, sw, n_strips, int(window_size))

    partials = pl.pallas_call(
        kernel,
        out_shape=jax.ShapeDtypeStruct((g_blocks, 8, 128), jnp.float32),
        grid_spec=pltpu.PrefetchScalarGridSpec(
            num_scalar_prefetch=0,
            grid=(g_blocks,),
            in_specs=[
                pl.BlockSpec((h, h), lambda i: (0, 0)),            # band matrix (shared)
                pl.BlockSpec(ctab.shape, lambda i: (0, 0)),        # W-tap coeffs (shared)
                pl.BlockSpec((1, lanes), lambda i: (0, i)),        # validity mask
                pl.BlockSpec((h, lanes), lambda i: (0, i)),        # pred block (B images)
                pl.BlockSpec((h, lanes), lambda i: (0, i)),        # target block
            ],
            out_specs=pl.BlockSpec((1, 8, 128), lambda i: (i, 0, 0)),
        ),
        compiler_params=pltpu.CompilerParams(
            dimension_semantics=("parallel",),                     # no carried state
        ),
    )(a_band, ctab, valid, x2d, y2d)

    mean_ssim = jnp.sum(partials) / jnp.float32(m * h * w)
    return 1.0 - mean_ssim


def _ssim_loss_ref(pred, target, window_size: int = WINDOW_SIZE, sigma: float = SIGMA):
    """Pure-JAX reference matching the PyTorch module (zero-padded conv2d)."""
    if pred.ndim == 5:
        b, t, c, h, w = pred.shape
        pred = pred.reshape(b * t, c, h, w)
        target = target.reshape(b * t, c, h, w)
    g = jnp.asarray(_gaussian_taps(window_size, sigma))
    win = (g[:, None] * g[None, :]).reshape(1, 1, window_size, window_size)
    pad = window_size // 2

    def conv(x):
        return jax.lax.conv_general_dilated(
            x.astype(jnp.float32), win, window_strides=(1, 1),
            padding=((pad, pad), (pad, pad)),
            dimension_numbers=("NCHW", "OIHW", "NCHW"))

    mu1, mu2 = conv(pred), conv(target)
    mu1_sq, mu2_sq, mu1_mu2 = mu1 ** 2, mu2 ** 2, mu1 * mu2
    s1 = conv(pred * pred) - mu1_sq
    s2 = conv(target * target) - mu2_sq
    s12 = conv(pred * target) - mu1_mu2
    ssim_map = ((2 * mu1_mu2 + C1) * (2 * s12 + C2)) / (
        (mu1_sq + mu2_sq + C1) * (s1 + s2 + C2))
    return 1.0 - ssim_map.mean()


if __name__ == "__main__":
    key = jax.random.PRNGKey(0)
    k1, k2 = jax.random.split(key)
    # 5-D (b, t, c, h, w) path of the module; c must be 1 (grayscale) for the
    # module's (1,1,K,K)/groups=1 conv -> 8 images of 16x16.
    pred = jax.random.uniform(k1, (2, 4, 1, 16, 16), dtype=jnp.float32)
    target = jax.random.uniform(k2, (2, 4, 1, 16, 16), dtype=jnp.float32)

    loss = ssim_loss(pred, target)
    jax.block_until_ready(loss)

    ref = _ssim_loss_ref(pred, target)
    assert jnp.allclose(loss, ref, atol=1e-2), (loss, ref)
    print("KERNEL_OK")
</pallas_src>

<mosaic_0001>
module attributes {stable_mosaic.version = 11 : i64} {
  func.func @kernel(%arg0: i32, %arg1: memref<16x16xf32, #tpu.memory_space<vmem>>, %arg2: memref<16x128xf32, #tpu.memory_space<vmem>>, %arg3: memref<1x128xf32, #tpu.memory_space<vmem>>, %arg4: memref<16x128xf32, #tpu.memory_space<vmem>>, %arg5: memref<16x128xf32, #tpu.memory_space<vmem>>, %arg6: memref<1x8x128xf32, #tpu.memory_space<vmem>>) attributes {dimension_semantics = [#tpu.dimension_semantics<parallel>], iteration_bounds = array<i64: 1>, scalar_prefetch = 0 : i64, scratch_operands = 0 : i64, tpu.core_type = #tpu.core_type<tc>, window_params = [{pipeline_mode = #tpu.pipeline_mode<synchronous>, transform_indices = @transform_0, window_bounds = array<i64: 16, 16>}, {pipeline_mode = #tpu.pipeline_mode<synchronous>, transform_indices = @transform_1, window_bounds = array<i64: 16, 128>}, {transform_indices = @transform_2, window_bounds = array<i64: 1, 128>}, {transform_indices = @transform_3, window_bounds = array<i64: 16, 128>}, {transform_indices = @transform_4, window_bounds = array<i64: 16, 128>}, {transform_indices = @transform_5, window_bounds = array<i64: 1, 8, 128>}]} {
    %c0 = arith.constant 0 : index
    %c0_0 = arith.constant 0 : index
    %0 = vector.load %arg1[%c0, %c0_0] : memref<16x16xf32, #tpu.memory_space<vmem>>, vector<16x16xf32>
    %c0_1 = arith.constant 0 : index
    %c0_2 = arith.constant 0 : index
    %1 = vector.load %arg2[%c0_1, %c0_2] : memref<16x128xf32, #tpu.memory_space<vmem>>, vector<16x128xf32>
    %2 = vector.extract_strided_slice %1 {offsets = [0, 0], sizes = [1, 128], strides = [1, 1]} : vector<16x128xf32> to vector<1x128xf32>
    %3 = vector.extract_strided_slice %1 {offsets = [1, 0], sizes = [1, 128], strides = [1, 1]} : vector<16x128xf32> to vector<1x128xf32>
    %4 = vector.extract_strided_slice %1 {offsets = [2, 0], sizes = [1, 128], strides = [1, 1]} : vector<16x128xf32> to vector<1x128xf32>
    %5 = vector.extract_strided_slice %1 {offsets = [3, 0], sizes = [1, 128], strides = [1, 1]} : vector<16x128xf32> to vector<1x128xf32>
    %6 = vector.extract_strided_slice %1 {offsets = [4, 0], sizes = [1, 128], strides = [1, 1]} : vector<16x128xf32> to vector<1x128xf32>
    %7 = vector.extract_strided_slice %1 {offsets = [5, 0], sizes = [1, 128], strides = [1, 1]} : vector<16x128xf32> to vector<1x128xf32>
    %8 = vector.extract_strided_slice %1 {offsets = [6, 0], sizes = [1, 128], strides = [1, 1]} : vector<16x128xf32> to vector<1x128xf32>
    %9 = vector.extract_strided_slice %1 {offsets = [7, 0], sizes = [1, 128], strides = [1, 1]} : vector<16x128xf32> to vector<1x128xf32>
    %10 = vector.extract_strided_slice %1 {offsets = [8, 0], sizes = [1, 128], strides = [1, 1]} : vector<16x128xf32> to vector<1x128xf32>
    %11 = vector.extract_strided_slice %1 {offsets = [9, 0], sizes = [1, 128], strides = [1, 1]} : vector<16x128xf32> to vector<1x128xf32>
    %12 = vector.extract_strided_slice %1 {offsets = [10, 0], sizes = [1, 128], strides = [1, 1]} : vector<16x128xf32> to vector<1x128xf32>
    %c0_3 = arith.constant 0 : index
    %c0_4 = arith.constant 0 : index
    %13 = vector.load %arg4[%c0_3, %c0_4] : memref<16x128xf32, #tpu.memory_space<vmem>>, vector<16x128xf32>
    %c0_5 = arith.constant 0 : index
    %c0_6 = arith.constant 0 : index
    %14 = vector.load %arg5[%c0_5, %c0_6] : memref<16x128xf32, #tpu.memory_space<vmem>>, vector<16x128xf32>
    %c0_7 = arith.constant 0 : index
    %c0_8 = arith.constant 0 : index
    %15 = vector.load %arg3[%c0_7, %c0_8] : memref<1x128xf32, #tpu.memory_space<vmem>>, vector<1x128xf32>
    %16 = arith.mulf %13, %13 : vector<16x128xf32>
    %17 = arith.mulf %14, %14 : vector<16x128xf32>
    %18 = arith.mulf %13, %14 : vector<16x128xf32>
    %19 = tpu.concatenate %13, %14, %16, %17, %18 in 1 : vector<16x128xf32>, vector<16x128xf32>, vector<16x128xf32>, vector<16x128xf32>, vector<16x128xf32> -> vector<16x640xf32>
    %cst = arith.constant dense<0.000000e+00> : vector<16x640xf32>
    %20 = tpu.matmul %0, %19, %cst {dimension_numbers = #tpu.dot_dimension_numbers<[1], [0], [0], [1], [0, 0, 1, 1], [], []>} : vector<16x16xf32>, vector<16x640xf32>, vector<16x640xf32> -> vector<16x640xf32>
    %21 = vector.extract_strided_slice %20 {offsets = [0, 0], sizes = [16, 128], strides = [1, 1]} : vector<16x640xf32> to vector<16x128xf32>
    %22 = vector.extract_strided_slice %20 {offsets = [0, 128], sizes = [16, 128], strides = [1, 1]} : vector<16x640xf32> to vector<16x128xf32>
    %23 = vector.extract_strided_slice %20 {offsets = [0, 256], sizes = [16, 128], strides = [1, 1]} : vector<16x640xf32> to vector<16x128xf32>
    %24 = vector.extract_strided_slice %20 {offsets = [0, 384], sizes = [16, 128], strides = [1, 1]} : vector<16x640xf32> to vector<16x128xf32>
    %25 = vector.extract_strided_slice %20 {offsets = [0, 512], sizes = [16, 128], strides = [1, 1]} : vector<16x640xf32> to vector<16x128xf32>
    %c5_i32 = arith.constant 5 : i32
    %26 = tpu.dynamic_rotate %21 by %c5_i32 dim 1 : vector<16x128xf32>, i32 -> vector<16x128xf32>
    %27 = vector.broadcast %2 : vector<1x128xf32> to vector<16x128xf32>
    %28 = arith.mulf %27, %26 : vector<16x128xf32>
    %c5_i32_9 = arith.constant 5 : i32
    %29 = tpu.dynamic_rotate %22 by %c5_i32_9 dim 1 : vector<16x128xf32>, i32 -> vector<16x128xf32>
    %30 = vector.broadcast %2 : vector<1x128xf32> to vector<16x128xf32>
    %31 = arith.mulf %30, %29 : vector<16x128xf32>
    %c5_i32_10 = arith.constant 5 : i32
    %32 = tpu.dynamic_rotate %23 by %c5_i32_10 dim 1 : vector<16x128xf32>, i32 -> vector<16x128xf32>
    %33 = vector.broadcast %2 : vector<1x128xf32> to vector<16x128xf32>
    %34 = arith.mulf %33, %32 : vector<16x128xf32>
    %c5_i32_11 = arith.constant 5 : i32
    %35 = tpu.dynamic_rotate %24 by %c5_i32_11 dim 1 : vector<16x128xf32>, i32 -> vector<16x128xf32>
    %36 = vector.broadcast %2 : vector<1x128xf32> to vector<16x128xf32>
    %37 = arith.mulf %36, %35 : vector<16x128xf32>
    %c5_i32_12 = arith.constant 5 : i32
    %38 = tpu.dynamic_rotate %25 by %c5_i32_12 dim 1 : vector<16x128xf32>, i32 -> vector<16x128xf32>
    %39 = vector.broadcast %2 : vector<1x128xf32> to vector<16x128xf32>
    %40 = arith.mulf %39, %38 : vector<16x128xf32>
    %c4_i32 = arith.constant 4 : i32
    %41 = tpu.dynamic_rotate %21 by %c4_i32 dim 1 : vector<16x128xf32>, i32 -> vector<16x128xf32>
    %42 = vector.broadcast %3 : vector<1x128xf32> to vector<16x128xf32>
    %43 = arith.mulf %42, %41 : vector<16x128xf32>
    %44 = arith.addf %28, %43 : vector<16x128xf32>
    %c4_i32_13 = arith.constant 4 : i32
    %45 = tpu.dynamic_rotate %22 by %c4_i32_13 dim 1 : vector<16x128xf32>, i32 -> vector<16x128xf32>
    %46 = vector.broadcast %3 : vector<1x128xf32> to vector<16x128xf32>
    %47 = arith.mulf %46, %45 : vector<16x128xf32>
    %48 = arith.addf %31, %47 : vector<16x128xf32>
    %c4_i32_14 = arith.constant 4 : i32
    %49 = tpu.dynamic_rotate %23 by %c4_i32_14 dim 1 : vector<16x128xf32>, i32 -> vector<16x128xf32>
    %50 = vector.broadcast %3 : vector<1x128xf32> to vector<16x128xf32>
    %51 = arith.mulf %50, %49 : vector<16x128xf32>
    %52 = arith.addf %34, %51 : vector<16x128xf32>
    %c4_i32_15 = arith.constant 4 : i32
    %53 = tpu.dynamic_rotate %24 by %c4_i32_15 dim 1 : vector<16x128xf32>, i32 -> vector<16x128xf32>
    %54 = vector.broadcast %3 : vector<1x128xf32> to vector<16x128xf32>
    %55 = arith.mulf %54, %53 : vector<16x128xf32>
    %56 = arith.addf %37, %55 : vector<16x128xf32>
    %c4_i32_16 = arith.constant 4 : i32
    %57 = tpu.dynamic_rotate %25 by %c4_i32_16 dim 1 : vector<16x128xf32>, i32 -> vector<16x128xf32>
    %58 = vector.broadcast %3 : vector<1x128xf32> to vector<16x128xf32>
    %59 = arith.mulf %58, %57 : vector<16x128xf32>
    %60 = arith.addf %40, %59 : vector<16x128xf32>
    %c3_i32 = arith.constant 3 : i32
    %61 = tpu.dynamic_rotate %21 by %c3_i32 dim 1 : vector<16x128xf32>, i32 -> vector<16x128xf32>
    %62 = vector.broadcast %4 : vector<1x128xf32> to vector<16x128xf32>
    %63 = arith.mulf %62, %61 : vector<16x128xf32>
    %64 = arith.addf %44, %63 : vector<16x128xf32>
    %c3_i32_17 = arith.constant 3 : i32
    %65 = tpu.dynamic_rotate %22 by %c3_i32_17 dim 1 : vector<16x128xf32>, i32 -> vector<16x128xf32>
    %66 = vector.broadcast %4 : vector<1x128xf32> to vector<16x128xf32>
    %67 = arith.mulf %66, %65 : vector<16x128xf32>
    %68 = arith.addf %48, %67 : vector<16x128xf32>
    %c3_i32_18 = arith.constant 3 : i32
    %69 = tpu.dynamic_rotate %23 by %c3_i32_18 dim 1 : vector<16x128xf32>, i32 -> vector<16x128xf32>
    %70 = vector.broadcast %4 : vector<1x128xf32> to vector<16x128xf32>
    %71 = arith.mulf %70, %69 : vector<16x128xf32>
    %72 = arith.addf %52, %71 : vector<16x128xf32>
    %c3_i32_19 = arith.constant 3 : i32
    %73 = tpu.dynamic_rotate %24 by %c3_i32_19 dim 1 : vector<16x128xf32>, i32 -> vector<16x128xf32>
    %74 = vector.broadcast %4 : vector<1x128xf32> to vector<16x128xf32>
    %75 = arith.mulf %74, %73 : vector<16x128xf32>
    %76 = arith.addf %56, %75 : vector<16x128xf32>
    %c3_i32_20 = arith.constant 3 : i32
    %77 = tpu.dynamic_rotate %25 by %c3_i32_20 dim 1 : vector<16x128xf32>, i32 -> vector<16x128xf32>
    %78 = vector.broadcast %4 : vector<1x128xf32> to vector<16x128xf32>
    %79 = arith.mulf %78, %77 : vector<16x128xf32>
    %80 = arith.addf %60, %79 : vector<16x128xf32>
    %c2_i32 = arith.constant 2 : i32
    %81 = tpu.dynamic_rotate %21 by %c2_i32 dim 1 : vector<16x128xf32>, i32 -> vector<16x128xf32>
    %82 = vector.broadcast %5 : vector<1x128xf32> to vector<16x128xf32>
    %83 = arith.mulf %82, %81 : vector<16x128xf32>
    %84 = arith.addf %64, %83 : vector<16x128xf32>
    %c2_i32_21 = arith.constant 2 : i32
    %85 = tpu.dynamic_rotate %22 by %c2_i32_21 dim 1 : vector<16x128xf32>, i32 -> vector<16x128xf32>
    %86 = vector.broadcast %5 : vector<1x128xf32> to vector<16x128xf32>
    %87 = arith.mulf %86, %85 : vector<16x128xf32>
    %88 = arith.addf %68, %87 : vector<16x128xf32>
    %c2_i32_22 = arith.constant 2 : i32
    %89 = tpu.dynamic_rotate %23 by %c2_i32_22 dim 1 : vector<16x128xf32>, i32 -> vector<16x128xf32>
    %90 = vector.broadcast %5 : vector<1x128xf32> to vector<16x128xf32>
    %91 = arith.mulf %90, %89 : vector<16x128xf32>
    %92 = arith.addf %72, %91 : vector<16x128xf32>
    %c2_i32_23 = arith.constant 2 : i32
    %93 = tpu.dynamic_rotate %24 by %c2_i32_23 dim 1 : vector<16x128xf32>, i32 -> vector<16x128xf32>
    %94 = vector.broadcast %5 : vector<1x128xf32> to vector<16x128xf32>
    %95 = arith.mulf %94, %93 : vector<16x128xf32>
    %96 = arith.addf %76, %95 : vector<16x128xf32>
    %c2_i32_24 = arith.constant 2 : i32
    %97 = tpu.dynamic_rotate %25 by %c2_i32_24 dim 1 : vector<16x128xf32>, i32 -> vector<16x128xf32>
    %98 = vector.broadcast %5 : vector<1x128xf32> to vector<16x128xf32>
    %99 = arith.mulf %98, %97 : vector<16x128xf32>
    %100 = arith.addf %80, %99 : vector<16x128xf32>
    %c1_i32 = arith.constant 1 : i32
    %101 = tpu.dynamic_rotate %21 by %c1_i32 dim 1 : vector<16x128xf32>, i32 -> vector<16x128xf32>
    %102 = vector.broadcast %6 : vector<1x128xf32> to vector<16x128xf32>
    %103 = arith.mulf %102, %101 : vector<16x128xf32>
    %104 = arith.addf %84, %103 : vector<16x128xf32>
    %c1_i32_25 = arith.constant 1 : i32
    %105 = tpu.dynamic_rotate %22 by %c1_i32_25 dim 1 : vector<16x128xf32>, i32 -> vector<16x128xf32>
    %106 = vector.broadcast %6 : vector<1x128xf32> to vector<16x128xf32>
    %107 = arith.mulf %106, %105 : vector<16x128xf32>
    %108 = arith.addf %88, %107 : vector<16x128xf32>
    %c1_i32_26 = arith.constant 1 : i32
    %109 = tpu.dynamic_rotate %23 by %c1_i32_26 dim 1 : vector<16x128xf32>, i32 -> vector<16x128xf32>
    %110 = vector.broadcast %6 : vector<1x128xf32> to vector<16x128xf32>
    %111 = arith.mulf %110, %109 : vector<16x128xf32>
    %112 = arith.addf %92, %111 : vector<16x128xf32>
    %c1_i32_27 = arith.constant 1 : i32
    %113 = tpu.dynamic_rotate %24 by %c1_i32_27 dim 1 : vector<16x128xf32>, i32 -> vector<16x128xf32>
    %114 = vector.broadcast %6 : vector<1x128xf32> to vector<16x128xf32>
    %115 = arith.mulf %114, %113 : vector<16x128xf32>
    %116 = arith.addf %96, %115 : vector<16x128xf32>
    %c1_i32_28 = arith.constant 1 : i32
    %117 = tpu.dynamic_rotate %25 by %c1_i32_28 dim 1 : vector<16x128xf32>, i32 -> vector<16x128xf32>
    %118 = vector.broadcast %6 : vector<1x128xf32> to vector<16x128xf32>
    %119 = arith.mulf %118, %117 : vector<16x128xf32>
    %120 = arith.addf %100, %119 : vector<16x128xf32>
    %121 = vector.broadcast %7 : vector<1x128xf32> to vector<16x128xf32>
    %122 = arith.mulf %121, %21 : vector<16x128xf32>
    %123 = arith.addf %104, %122 : vector<16x128xf32>
    %124 = vector.broadcast %7 : vector<1x128xf32> to vector<16x128xf32>
    %125 = arith.mulf %124, %22 : vector<16x128xf32>
    %126 = arith.addf %108, %125 : vector<16x128xf32>
    %127 = vector.broadcast %7 : vector<1x128xf32> to vector<16x128xf32>
    %128 = arith.mulf %127, %23 : vector<16x128xf32>
    %129 = arith.addf %112, %128 : vector<16x128xf32>
    %130 = vector.broadcast %7 : vector<1x128xf32> to vector<16x128xf32>
    %131 = arith.mulf %130, %24 : vector<16x128xf32>
    %132 = arith.addf %116, %131 : vector<16x128xf32>
    %133 = vector.broadcast %7 : vector<1x128xf32> to vector<16x128xf32>
    %134 = arith.mulf %133, %25 : vector<16x128xf32>
    %135 = arith.addf %120, %134 : vector<16x128xf32>
    %c127_i32 = arith.constant 127 : i32
    %136 = tpu.dynamic_rotate %21 by %c127_i32 dim 1 : vector<16x128xf32>, i32 -> vector<16x128xf32>
    %137 = vector.broadcast %8 : vector<1x128xf32> to vector<16x128xf32>
    %138 = arith.mulf %137, %136 : vector<16x128xf32>
    %139 = arith.addf %123, %138 : vector<16x128xf32>
    %c127_i32_29 = arith.constant 127 : i32
    %140 = tpu.dynamic_rotate %22 by %c127_i32_29 dim 1 : vector<16x128xf32>, i32 -> vector<16x128xf32>
    %141 = vector.broadcast %8 : vector<1x128xf32> to vector<16x128xf32>
    %142 = arith.mulf %141, %140 : vector<16x128xf32>
    %143 = arith.addf %126, %142 : vector<16x128xf32>
    %c127_i32_30 = arith.constant 127 : i32
    %144 = tpu.dynamic_rotate %23 by %c127_i32_30 dim 1 : vector<16x128xf32>, i32 -> vector<16x128xf32>
    %145 = vector.broadcast %8 : vector<1x128xf32> to vector<16x128xf32>
    %146 = arith.mulf %145, %144 : vector<16x128xf32>
    %147 = arith.addf %129, %146 : vector<16x128xf32>
    %c127_i32_31 = arith.constant 127 : i32
    %148 = tpu.dynamic_rotate %24 by %c127_i32_31 dim 1 : vector<16x128xf32>, i32 -> vector<16x128xf32>
    %149 = vector.broadcast %8 : vector<1x128xf32> to vector<16x128xf32>
    %150 = arith.mulf %149, %148 : vector<16x128xf32>
    %151 = arith.addf %132, %150 : vector<16x128xf32>
    %c127_i32_32 = arith.constant 127 : i32
    %152 = tpu.dynamic_rotate %25 by %c127_i32_32 dim 1 : vector<16x128xf32>, i32 -> vector<16x128xf32>
    %153 = vector.broadcast %8 : vector<1x128xf32> to vector<16x128xf32>
    %154 = arith.mulf %153, %152 : vector<16x128xf32>
    %155 = arith.addf %135, %154 : vector<16x128xf32>
    %c126_i32 = arith.constant 126 : i32
    %156 = tpu.dynamic_rotate %21 by %c126_i32 dim 1 : vector<16x128xf32>, i32 -> vector<16x128xf32>
    %157 = vector.broadcast %9 : vector<1x128xf32> to vector<16x128xf32>
    %158 = arith.mulf %157, %156 : vector<16x128xf32>
    %159 = arith.addf %139, %158 : vector<16x128xf32>
    %c126_i32_33 = arith.constant 126 : i32
    %160 = tpu.dynamic_rotate %22 by %c126_i32_33 dim 1 : vector<16x128xf32>, i32 -> vector<16x128xf32>
    %161 = vector.broadcast %9 : vector<1x128xf32> to vector<16x128xf32>
    %162 = arith.mulf %161, %160 : vector<16x128xf32>
    %163 = arith.addf %143, %162 : vector<16x128xf32>
    %c126_i32_34 = arith.constant 126 : i32
    %164 = tpu.dynamic_rotate %23 by %c126_i32_34 dim 1 : vector<16x128xf32>, i32 -> vector<16x128xf32>
    %165 = vector.broadcast %9 : vector<1x128xf32> to vector<16x128xf32>
    %166 = arith.mulf %165, %164 : vector<16x128xf32>
    %167 = arith.addf %147, %166 : vector<16x128xf32>
    %c126_i32_35 = arith.constant 126 : i32
    %168 = tpu.dynamic_rotate %24 by %c126_i32_35 dim 1 : vector<16x128xf32>, i32 -> vector<16x128xf32>
    %169 = vector.broadcast %9 : vector<1x128xf32> to vector<16x128xf32>
    %170 = arith.mulf %169, %168 : vector<16x128xf32>
    %171 = arith.addf %151, %170 : vector<16x128xf32>
    %c126_i32_36 = arith.constant 126 : i32
    %172 = tpu.dynamic_rotate %25 by %c126_i32_36 dim 1 : vector<16x128xf32>, i32 -> vector<16x128xf32>
    %173 = vector.broadcast %9 : vector<1x128xf32> to vector<16x128xf32>
    %174 = arith.mulf %173, %172 : vector<16x128xf32>
    %175 = arith.addf %155, %174 : vector<16x128xf32>
    %c125_i32 = arith.constant 125 : i32
    %176 = tpu.dynamic_rotate %21 by %c125_i32 dim 1 : vector<16x128xf32>, i32 -> vector<16x128xf32>
    %177 = vector.broadcast %10 : vector<1x128xf32> to vector<16x128xf32>
    %178 = arith.mulf %177, %176 : vector<16x128xf32>
    %179 = arith.addf %159, %178 : vector<16x128xf32>
    %c125_i32_37 = arith.constant 125 : i32
    %180 = tpu.dynamic_rotate %22 by %c125_i32_37 dim 1 : vector<16x128xf32>, i32 -> vector<16x128xf32>
    %181 = vector.broadcast %10 : vector<1x128xf32> to vector<16x128xf32>
    %182 = arith.mulf %181, %180 : vector<16x128xf32>
    %183 = arith.addf %163, %182 : vector<16x128xf32>
    %c125_i32_38 = arith.constant 125 : i32
    %184 = tpu.dynamic_rotate %23 by %c125_i32_38 dim 1 : vector<16x128xf32>, i32 -> vector<16x128xf32>
    %185 = vector.broadcast %10 : vector<1x128xf32> to vector<16x128xf32>
    %186 = arith.mulf %185, %184 : vector<16x128xf32>
    %187 = arith.addf %167, %186 : vector<16x128xf32>
    %c125_i32_39 = arith.constant 125 : i32
    %188 = tpu.dynamic_rotate %24 by %c125_i32_39 dim 1 : vector<16x128xf32>, i32 -> vector<16x128xf32>
    %189 = vector.broadcast %10 : vector<1x128xf32> to vector<16x128xf32>
    %190 = arith.mulf %189, %188 : vector<16x128xf32>
    %191 = arith.addf %171, %190 : vector<16x128xf32>
    %c125_i32_40 = arith.constant 125 : i32
    %192 = tpu.dynamic_rotate %25 by %c125_i32_40 dim 1 : vector<16x128xf32>, i32 -> vector<16x128xf32>
    %193 = vector.broadcast %10 : vector<1x128xf32> to vector<16x128xf32>
    %194 = arith.mulf %193, %192 : vector<16x128xf32>
    %195 = arith.addf %175, %194 : vector<16x128xf32>
    %c124_i32 = arith.constant 124 : i32
    %196 = tpu.dynamic_rotate %21 by %c124_i32 dim 1 : vector<16x128xf32>, i32 -> vector<16x128xf32>
    %197 = vector.broadcast %11 : vector<1x128xf32> to vector<16x128xf32>
    %198 = arith.mulf %197, %196 : vector<16x128xf32>
    %199 = arith.addf %179, %198 : vector<16x128xf32>
    %c124_i32_41 = arith.constant 124 : i32
    %200 = tpu.dynamic_rotate %22 by %c124_i32_41 dim 1 : vector<16x128xf32>, i32 -> vector<16x128xf32>
    %201 = vector.broadcast %11 : vector<1x128xf32> to vector<16x128xf32>
    %202 = arith.mulf %201, %200 : vector<16x128xf32>
    %203 = arith.addf %183, %202 : vector<16x128xf32>
    %c124_i32_42 = arith.constant 124 : i32
    %204 = tpu.dynamic_rotate %23 by %c124_i32_42 dim 1 : vector<16x128xf32>, i32 -> vector<16x128xf32>
    %205 = vector.broadcast %11 : vector<1x128xf32> to vector<16x128xf32>
    %206 = arith.mulf %205, %204 : vector<16x128xf32>
    %207 = arith.addf %187, %206 : vector<16x128xf32>
    %c124_i32_43 = arith.constant 124 : i32
    %208 = tpu.dynamic_rotate %24 by %c124_i32_43 dim 1 : vector<16x128xf32>, i32 -> vector<16x128xf32>
    %209 = vector.broadcast %11 : vector<1x128xf32> to vector<16x128xf32>
    %210 = arith.mulf %209, %208 : vector<16x128xf32>
    %211 = arith.addf %191, %210 : vector<16x128xf32>
    %c124_i32_44 = arith.constant 124 : i32
    %212 = tpu.dynamic_rotate %25 by %c124_i32_44 dim 1 : vector<16x128xf32>, i32 -> vector<16x128xf32>
    %213 = vector.broadcast %11 : vector<1x128xf32> to vector<16x128xf32>
    %214 = arith.mulf %213, %212 : vector<16x128xf32>
    %215 = arith.addf %195, %214 : vector<16x128xf32>
    %c123_i32 = arith.constant 123 : i32
    %216 = tpu.dynamic_rotate %21 by %c123_i32 dim 1 : vector<16x128xf32>, i32 -> vector<16x128xf32>
    %217 = vector.broadcast %12 : vector<1x128xf32> to vector<16x128xf32>
    %218 = arith.mulf %217, %216 : vector<16x128xf32>
    %219 = arith.addf %199, %218 : vector<16x128xf32>
    %c123_i32_45 = arith.constant 123 : i32
    %220 = tpu.dynamic_rotate %22 by %c123_i32_45 dim 1 : vector<16x128xf32>, i32 -> vector<16x128xf32>
    %221 = vector.broadcast %12 : vector<1x128xf32> to vector<16x128xf32>
    %222 = arith.mulf %221, %220 : vector<16x128xf32>
    %223 = arith.addf %203, %222 : vector<16x128xf32>
    %c123_i32_46 = arith.constant 123 : i32
    %224 = tpu.dynamic_rotate %23 by %c123_i32_46 dim 1 : vector<16x128xf32>, i32 -> vector<16x128xf32>
    %225 = vector.broadcast %12 : vector<1x128xf32> to vector<16x128xf32>
    %226 = arith.mulf %225, %224 : vector<16x128xf32>
    %227 = arith.addf %207, %226 : vector<16x128xf32>
    %c123_i32_47 = arith.constant 123 : i32
    %228 = tpu.dynamic_rotate %24 by %c123_i32_47 dim 1 : vector<16x128xf32>, i32 -> vector<16x128xf32>
    %229 = vector.broadcast %12 : vector<1x128xf32> to vector<16x128xf32>
    %230 = arith.mulf %229, %228 : vector<16x128xf32>
    %231 = arith.addf %211, %230 : vector<16x128xf32>
    %c123_i32_48 = arith.constant 123 : i32
    %232 = tpu.dynamic_rotate %25 by %c123_i32_48 dim 1 : vector<16x128xf32>, i32 -> vector<16x128xf32>
    %233 = vector.broadcast %12 : vector<1x128xf32> to vector<16x128xf32>
    %234 = arith.mulf %233, %232 : vector<16x128xf32>
    %235 = arith.addf %215, %234 : vector<16x128xf32>
    %236 = arith.mulf %219, %219 : vector<16x128xf32>
    %237 = arith.mulf %223, %223 : vector<16x128xf32>
    %238 = arith.mulf %219, %223 : vector<16x128xf32>
    %239 = arith.subf %227, %236 : vector<16x128xf32>
    %240 = arith.subf %231, %237 : vector<16x128xf32>
    %241 = arith.subf %235, %238 : vector<16x128xf32>
    %cst_49 = arith.constant 2.000000e+00 : f32
    %242 = vector.broadcast %cst_49 : f32 to vector<16x128xf32>
    %243 = arith.mulf %242, %238 : vector<16x128xf32>
    %cst_50 = arith.constant 9.99999974E-5 : f32
    %244 = vector.broadcast %cst_50 : f32 to vector<16x128xf32>
    %245 = arith.addf %243, %244 : vector<16x128xf32>
    %cst_51 = arith.constant 2.000000e+00 : f32
    %246 = vector.broadcast %cst_51 : f32 to vector<16x128xf32>
    %247 = arith.mulf %246, %241 : vector<16x128xf32>
    %cst_52 = arith.constant 8.99999984E-4 : f32
    %248 = vector.broadcast %cst_52 : f32 to vector<16x128xf32>
    %249 = arith.addf %247, %248 : vector<16x128xf32>
    %250 = arith.mulf %245, %249 : vector<16x128xf32>
    %251 = arith.addf %236, %237 : vector<16x128xf32>
    %cst_53 = arith.constant 9.99999974E-5 : f32
    %252 = vector.broadcast %cst_53 : f32 to vector<16x128xf32>
    %253 = arith.addf %251, %252 : vector<16x128xf32>
    %254 = arith.addf %239, %240 : vector<16x128xf32>
    %cst_54 = arith.constant 8.99999984E-4 : f32
    %255 = vector.broadcast %cst_54 : f32 to vector<16x128xf32>
    %256 = arith.addf %254, %255 : vector<16x128xf32>
    %257 = arith.mulf %253, %256 : vector<16x128xf32>
    %258 = tpu.reciprocal %257 {approx = true} : vector<16x128xf32> -> vector<16x128xf32>
    %259 = arith.mulf %250, %258 : vector<16x128xf32>
    %260 = vector.broadcast %15 : vector<1x128xf32> to vector<16x128xf32>
    %261 = arith.mulf %259, %260 : vector<16x128xf32>
    %cst_55 = arith.constant dense<0.000000e+00> : vector<128xf32>
    %262 = vector.multi_reduction <add>, %261, %cst_55 [0] : vector<16x128xf32> to vector<128xf32>
    %263 = vector.shape_cast %262 : vector<128xf32> to vector<1x128xf32>
    %cst_56 = arith.constant 0.000000e+00 : f32
    %264 = vector.broadcast %cst_56 : f32 to vector<7x128xf32>
    %265 = tpu.concatenate %263, %264 in 0 : vector<1x128xf32>, vector<7x128xf32> -> vector<8x128xf32>
    %c0_57 = arith.constant 0 : index
    %c0_58 = arith.constant 0 : index
    %c0_59 = arith.constant 0 : index
    %266 = vector.load %arg6[%c0_57, %c0_58, %c0_59] : memref<1x8x128xf32, #tpu.memory_space<vmem>>, vector<1x8x128xf32>
    %267 = vector.shape_cast %266 : vector<1x8x128xf32> to vector<8x128xf32>
    %268 = vector.shape_cast %265 : vector<8x128xf32> to vector<1x8x128xf32>
    tpu.vector_store %arg6[%c0_57, %c0_58, %c0_59], %268 {strides = array<i32>} : memref<1x8x128xf32, #tpu.memory_space<vmem>>, vector<1x8x128xf32>,
    return
  }
  func.func @transform_0(%arg0: i32) -> (i32, i32) {
    %c0_i32 = arith.constant 0 : i32
    %c0_i32_0 = arith.constant 0 : i32
    %c0_i32_1 = arith.constant 0 : i32
    return %c0_i32, %c0_i32_0 : i32, i32
  }
  func.func @transform_1(%arg0: i32) -> (i32, i32) {
    %c0_i32 = arith.constant 0 : i32
    %c0_i32_0 = arith.constant 0 : i32
    %c0_i32_1 = arith.constant 0 : i32
    return %c0_i32, %c0_i32_0 : i32, i32
  }
  func.func @transform_2(%arg0: i32) -> (i32, i32) {
    %c0_i32 = arith.constant 0 : i32
    %c0_i32_0 = arith.constant 0 : i32
    return %c0_i32, %arg0 : i32, i32
  }
  func.func @transform_3(%arg0: i32) -> (i32, i32) {
    %c0_i32 = arith.constant 0 : i32
    %c0_i32_0 = arith.constant 0 : i32
    return %c0_i32, %arg0 : i32, i32
  }
  func.func @transform_4(%arg0: i32) -> (i32, i32) {
    %c0_i32 = arith.constant 0 : i32
    %c0_i32_0 = arith.constant 0 : i32
    return %c0_i32, %arg0 : i32, i32
  }
  func.func @transform_5(%arg0: i32) -> (i32, i32, i32) {
    %c0_i32 = arith.constant 0 : i32
    %c0_i32_0 = arith.constant 0 : i32
    %c0_i32_1 = arith.constant 0 : i32
    return %arg0, %c0_i32, %c0_i32_0 : i32, i32, i32
  }
}

</mosaic_0001>

<bundles_post_ra>
// kernel: ssim_loss.1
= control target key start
LH: loop header
LB: loop body
LE: loop exit
PB: predicated region body
PF: predicated region fallthrough
CT: control target
= control target key end

     0   :  { %vm35_vm0 = vcmask 130048   ;;  %s663_s30 = smov 2   ;;  %s664_s6 = smov 1   ;;  %vm626_vm1 = vcmask 1040384   ;;  %s1163_s3 = inlined_call_operand.vmem [shape: f32[16,128], index: 3, kind: input, shape index: {}]   ;;  %s1164_s0 = inlined_call_operand.vmem [shape: f32[16,16], index: 0, kind: input, shape index: {}]   ;;  %s1165_s4 = inlined_call_operand.vmem [shape: f32[16,128], index: 4, kind: input, shape index: {}]   ;;  %s1166_s1 = inlined_call_operand.vmem [shape: f32[16,128], index: 1, kind: input, shape index: {}]   ;;  %s1167_s2 = inlined_call_operand.vmem [shape: f32[1,128], index: 2, kind: input, shape index: {}]   ;;  %s1168_s5 = inlined_call_operand.vmem [shape: f32[1,8,128], index: 5, kind: output, shape index: {}]  }
   0x1   :  { %v25_v0 = vld [vmem:[%s1163_s3 + $0x8] sm:$0xff]  ;;  %v24_v1 = vld [vmem:[%s1163_s3] sm:$0xff]  ;;  %s661_s3 = smov 5   ;;  %s665_s7 = smov 127  }
   0x2   :  { %v20_v2 = vld [vmem:[%s1164_s0] sm:$0xff]  ;;  %56 = vmatpush.msra.mxu0 %v25_v0  ;;  %643 = vmatpush.msra.mxu1 %v25_v0  ;;  %v21_v3 = vld [vmem:[%s1164_s0 + $0x8] sm:$0xff]  ;;  %v30_v6 = vmul.f32 %v25_v0, %v25_v0  ;;  %v29_v9 = vmul.f32 %v24_v1, %v24_v1  ;;  %s660_s0 = smov 4   ;;  %s666_s10 = smov 126  }
   0x3   :  { %v27_v4 = vld [vmem:[%s1165_s4 + $0x8] sm:$0xff]  ;;  %v26_v5 = vld [vmem:[%s1165_s4] sm:$0xff]  ;;  %s662_s4 = smov 3   ;;  %s667_s11 = smov 125  }
   0x4   :  { %v32_v7 = vmul.f32 %v27_v4, %v27_v4  ;;  %v34_v8 = vmul.f32 %v27_v4, %v25_v0  ;;  %57 = vmatpush.msra.mxu0 %v24_v1  ;;  %644 = vmatpush.msra.mxu1 %v24_v1  ;;  %v31_v10 = vmul.f32 %v26_v5, %v26_v5  ;;  %v835_v25 = vld [vmem:[%s1166_s1] sm:$0xff]  ;;  %s668_s12 = smov 124   ;;  %s669_s13 = smov 123  }
   0x5   :  { %633 = vmatmul.msk.f32.vlgmr.msra.gmra.mxu0 %vm35_vm0, %v20_v2  ;;  %634 = vmatmul.msk.f32.vlgmr.msra.gmra.mxu1 %vm35_vm0, %v21_v3  ;;  %v33_v11 = vmul.f32 %v26_v5, %v24_v1  ;;  %v842_v26 = vperm.slane %v835_v25, 0  ;;  %v845_v27 = vperm.slane %v835_v25, 1  ;;  %v850_v28 = vperm.slane %v835_v25, 2 }
   0x6   :  { %79 = vmatpush.msrb.mxu1 %v27_v4  ;;  %102 = vmatpush.msra.mxu2 %v30_v6  ;;  %v870_v43 = vperm.slane %v835_v25, 3  ;;  %v875_v47 = vperm.slane %v835_v25, 4  ;;  %v890_v60 = vperm.slane %v835_v25, 5  ;;  %v895_v62 = vperm.slane %v835_v25, 6 }
   0x7   :  { %125 = vmatpush.msra.mxu3 %v32_v7  ;;  %148 = vmatpush.msrb.mxu0 %v34_v8 }
   0x8   :  { %80 = vmatpush.msrb.mxu1 %v26_v5  ;;  %103 = vmatpush.msra.mxu2 %v29_v9 }
   0x9   :  { %126 = vmatpush.msra.mxu3 %v31_v10  ;;  %637 = vmatmul.msk.f32.vlgmr.msra.gmra.mxu2 %vm35_vm0, %v20_v2 }
   0xa   :  { %639 = vmatmul.msk.f32.vlgmr.msra.gmra.mxu3 %vm35_vm0, %v20_v2  ;;  %149 = vmatpush.msrb.mxu0 %v33_v11 }
   0xd   :  { %635 = vmatmul.msk.f32.vlgmr.msrb.gmra.mxu1 %vm35_vm0, %v20_v2  ;;  %641 = vmatmul.msk.f32.vlgmr.msrb.gmra.mxu0 %vm35_vm0, %v20_v2 }
  0x11   :  { %638 = vmatmul.msk.f32.gmra.mxu2 %vm35_vm0, %v21_v3 }
  0x12   :  { %640 = vmatmul.msk.f32.gmra.mxu3 %vm35_vm0, %v21_v3 }
  0x15   :  { %636 = vmatmul.msk.f32.gmra.mxu1 %vm35_vm0, %v21_v3  ;;  %642 = vmatmul.msk.f32.gmra.mxu0 %vm35_vm0, %v21_v3 }
  0x82   :  { %v728_v12 = vpop.f32.mrf.mxu0  ;;  %v730_v13 = vpop.f32.mrf.mxu1 }
  0x83   :  { %190 = vrot.lane.b32.xlu2 %v730_v13, %s660_s0  ;;  %188 = vrot.lane.b32.xlu1 %v728_v12, %s660_s0  ;;  %v353_v2 = vmul.f32 %v890_v60, %v728_v12  ;;  %v354_v5 = vmul.f32 %v890_v60, %v730_v13 }
  0x84   :  { %157 = vrot.lane.b32.xlu0 %v728_v12, %s661_s3 }
  0x8a   :  { %v750_v14 = vpop.f32.mrf.mxu1  ;;  %v768_v17 = vpop.f32.mrf.mxu0 }
  0x8b   :  { %229 = vrot.lane.b32.xlu2 %v728_v12, %s662_s4  ;;  %272 = vrot.lane.b32.xlu1 %v730_v13, %s663_s30 }
  0x8c   :  { %159 = vrot.lane.b32.xlu0 %v730_v13, %s661_s3  ;;  %v758_v15 = vpop.f32.mrf.mxu2 }
  0x8d   :  { %v760_v16 = vpop.f32.mrf.mxu3 }
  0x92   :  { %v800_v18 = vpop.f32.mrf.mxu1  ;;  %v824_v23 = vpop.f32.mrf.mxu0 }
  0x93   :  { %313 = vrot.lane.b32.xlu2 %v730_v13, %s664_s6  ;;  %311 = vrot.lane.b32.xlu1 %v728_v12, %s664_s6 }
  0x94   :  { %231 = vrot.lane.b32.xlu0 %v730_v13, %s662_s4  ;;  %v816_v21 = vpop.f32.mrf.mxu2 }
  0x95   :  { %v808_v19 = vpop.f32.mrf.mxu3 }
  0x9b   :  { %373 = vrot.lane.b32.xlu2 %v728_v12, %s665_s7  ;;  %164 = vrot.lane.b32.xlu1 %v750_v14, %s661_s3 }
  0x9c   :  { %270 = vrot.lane.b32.xlu0 %v728_v12, %s663_s30 }
  0xa3   :  { %170 = vrot.lane.b32.xlu2 %v758_v15, %s661_s3  ;;  %213 = vrot.lane.b32.xlu1 %v760_v16, %s660_s0 }
  0xa4   :  { %375 = vrot.lane.b32.xlu0 %v730_v13, %s665_s7 }
  0xab   :  { %238 = vrot.lane.b32.xlu1 %v750_v14, %s662_s4  ;;  %182 = vrot.lane.b32.xlu2 %v768_v17, %s661_s3 }
  0xac   :  { %176 = vrot.lane.b32.xlu0 %v760_v16, %s661_s3 }
  0xb3   :  { %262 = vrot.lane.b32.xlu1 %v768_v17, %s662_s4  ;;  %205 = vrot.lane.b32.xlu2 %v758_v15, %s660_s0 }
  0xb4   :  { %197 = vrot.lane.b32.xlu0 %v750_v14, %s660_s0 }
  0xbb   :  { %287 = vrot.lane.b32.xlu1 %v758_v15, %s663_s30  ;;  %254 = vrot.lane.b32.xlu2 %v760_v16, %s662_s4 }
  0xbc   :  { %221 = vrot.lane.b32.xlu0 %v768_v17, %s660_s0 }
  0xc3   :  { %336 = vrot.lane.b32.xlu1 %v760_v16, %s664_s6  ;;  %279 = vrot.lane.b32.xlu2 %v750_v14, %s663_s30 }
  0xc4   :  { %246 = vrot.lane.b32.xlu0 %v758_v15, %s662_s4 }
  0xcb   :  { %382 = vrot.lane.b32.xlu1 %v750_v14, %s665_s7  ;;  %303 = vrot.lane.b32.xlu2 %v768_v17, %s663_s30 }
  0xcc   :  { %295 = vrot.lane.b32.xlu0 %v760_v16, %s663_s30 }
  0xd3   :  { %166 = vrot.lane.b32.xlu1 %v800_v18, %s661_s3  ;;  %328 = vrot.lane.b32.xlu2 %v758_v15, %s664_s6 }
  0xd4   :  { %320 = vrot.lane.b32.xlu0 %v750_v14, %s664_s6 }
  0xdb   :  { %178 = vrot.lane.b32.xlu1 %v808_v19, %s661_s3  ;;  %398 = vrot.lane.b32.xlu2 %v760_v16, %s665_s7 }
  0xdc   :  { %344 = vrot.lane.b32.xlu0 %v768_v17, %s664_s6 }
  0xdd   :  { %v191_v20 = vpop.permute.xlu2 %190 }
  0xde   :  { %v194_v40 = vmul.f32 %v845_v27, %v191_v20 }
  0xe3   :  { %199 = vrot.lane.b32.xlu1 %v800_v18, %s660_s0  ;;  %172 = vrot.lane.b32.xlu2 %v816_v21, %s661_s3 }
  0xe4   :  { %390 = vrot.lane.b32.xlu0 %v758_v15, %s665_s7 }
  0xe5   :  { %v230_v22 = vpop.permute.xlu2 %229 }
  0xe6   :  { %v234_v34 = vmul.f32 %v850_v28, %v230_v22 }
  0xeb   :  { %215 = vrot.lane.b32.xlu2 %v808_v19, %s660_s0  ;;  %223 = vrot.lane.b32.xlu1 %v824_v23, %s660_s0 }
  0xec   :  { %184 = vrot.lane.b32.xlu0 %v824_v23, %s661_s3 }
  0xed   :  { %v314_v24 = vpop.permute.xlu2 %313 }
  0xee   :  { %v317_v51 = vmul.f32 %v875_v47, %v314_v24 }
  0xf3   :  { %240 = vrot.lane.b32.xlu2 %v800_v18, %s662_s4  ;;  %248 = vrot.lane.b32.xlu1 %v816_v21, %s662_s4 }
  0xf4   :  { %207 = vrot.lane.b32.xlu0 %v816_v21, %s660_s0 }
  0xf5   :  { %v374_v29 = vpop.permute.xlu2 %373  ;;  %v189_v30 = vpop.permute.xlu1 %188 }
  0xf6   :  { %v193_v31 = vmul.f32 %v845_v27, %v189_v30  ;;  %v158_v32 = vpop.permute.xlu0 %157  ;;  %v378_v3 = vmul.f32 %v895_v62, %v374_v29 }
  0xf7   :  { %v162_v33 = vmul.f32 %v842_v26, %v158_v32 }
  0xf9   :  { %v195_v35 = vadd.f32 %v193_v31, %v162_v33 }
  0xfb   :  { %264 = vrot.lane.b32.xlu2 %v824_v23, %s662_s4  ;;  %297 = vrot.lane.b32.xlu1 %v808_v19, %s663_s30  ;;  %v236_v36 = vadd.f32 %v234_v34, %v195_v35 }
  0xfc   :  { %256 = vrot.lane.b32.xlu0 %v808_v19, %s662_s4 }
  0xfd   :  { %v171_v37 = vpop.permute.xlu2 %170  ;;  %v273_v38 = vpop.permute.xlu1 %272 }
  0xfe   :  { %v160_v39 = vpop.permute.xlu0 %159  ;;  %v276_v49 = vmul.f32 %v870_v43, %v273_v38  ;;  %v174_v53 = vmul.f32 %v171_v37, %v842_v26 }
  0xff   :  { %v163_v41 = vmul.f32 %v842_v26, %v160_v39 }
 0x101   :  { %v196_v42 = vadd.f32 %v194_v40, %v163_v41 }
 0x103   :  { %289 = vrot.lane.b32.xlu2 %v816_v21, %s663_s30  ;;  %322 = vrot.lane.b32.xlu1 %v800_v18, %s664_s6 }
 0x104   :  { %281 = vrot.lane.b32.xlu0 %v800_v18, %s663_s30 }
 0x105   :  { %v312_v44 = vpop.permute.xlu1 %311  ;;  %v872_v45 = vpop.permute.xlu2 %182 }
 0x106   :  { %v232_v46 = vpop.permute.xlu0 %231  ;;  %v316_v63 = vmul.f32 %v875_v47, %v312_v44 }
 0x107   :  { %v235_v48 = vmul.f32 %v850_v28, %v232_v46 }
 0x109   :  { %v237_v50 = vadd.f32 %v235_v48, %v196_v42 }
 0x10b   :  { %v278_v52 = vadd.f32 %v276_v49, %v237_v50  ;;  %338 = vrot.lane.b32.xlu2 %v808_v19, %s664_s6  ;;  %346 = vrot.lane.b32.xlu1 %v824_v23, %s664_s6 }
 0x10c   :  { %305 = vrot.lane.b32.xlu0 %v824_v23, %s663_s30 }
 0x10d   :  { %v165_v54 = vpop.permute.xlu1 %164  ;;  %v206_v55 = vpop.permute.xlu2 %205  ;;  %v319_v56 = vadd.f32 %v317_v51, %v278_v52  ;;  %v186_v51 = vmul.f32 %v872_v45, %v842_v26 }
 0x10e   :  { %v271_v57 = vpop.permute.xlu0 %270  ;;  %v209_v58 = vmul.f32 %v206_v55, %v845_v27  ;;  %v168_v38 = vmul.f32 %v165_v54, %v842_v26 }
 0x10f   :  { %v275_v59 = vmul.f32 %v870_v43, %v271_v57  ;;  %v356_v9 = vadd.f32 %v354_v5, %v319_v56 }
 0x110   :  { %v892_v61 = vadd.f32 %v209_v58, %v174_v53 }
 0x111   :  { %v277_v0 = vadd.f32 %v275_v59, %v236_v36 }
 0x113   :  { %v318_v1 = vadd.f32 %v316_v63, %v277_v0  ;;  %384 = vrot.lane.b32.xlu2 %v800_v18, %s665_s7  ;;  %392 = vrot.lane.b32.xlu1 %v816_v21, %s665_s7 }
 0x114   :  { %330 = vrot.lane.b32.xlu0 %v816_v21, %s664_s6 }
 0x115   :  { %v214_v4 = vpop.permute.xlu1 %213  ;;  %v255_v6 = vpop.permute.xlu2 %254  ;;  %v355_v7 = vadd.f32 %v353_v2, %v318_v1 }
 0x116   :  { %v376_v8 = vpop.permute.xlu0 %375  ;;  %v217_v30 = vmul.f32 %v214_v4, %v845_v27  ;;  %v258_v32 = vmul.f32 %v255_v6, %v850_v28 }
 0x117   :  { %v379_v10 = vmul.f32 %v895_v62, %v376_v8  ;;  %v910_v11 = vadd.f32 %v378_v3, %v355_v7 }
 0x119   :  { %v912_v20 = vadd.f32 %v379_v10, %v356_v9 }
 0x11b   :  { %408 = vrot.lane.b32.xlu2 %v824_v23, %s665_s7  ;;  %406 = vrot.lane.b32.xlu1 %v768_v17, %s665_s7 }
 0x11c   :  { %400 = vrot.lane.b32.xlu0 %v808_v19, %s665_s7 }
 0x11d   :  { %v239_v22 = vpop.permute.xlu1 %238  ;;  %v280_v24 = vpop.permute.xlu2 %279 }
 0x11e   :  { %v177_v29 = vpop.permute.xlu0 %176  ;;  %v242_v40 = vmul.f32 %v239_v22, %v850_v28  ;;  %v283_v42 = vmul.f32 %v280_v24, %v870_v43  ;;  %v365_v22 = vmul.f32 %v890_v60, %v760_v16 }
 0x11f   :  { %v180_v31 = vmul.f32 %v177_v29, %v842_v26 }
 0x121   :  { %v219_v33 = vadd.f32 %v217_v30, %v180_v31 }
 0x123   :  { %423 = vrot.lane.b32.xlu2 %v750_v14, %s666_s10  ;;  %416 = vrot.lane.b32.xlu1 %v730_v13, %s666_s10  ;;  %v260_v34 = vadd.f32 %v258_v32, %v219_v33 }
 0x124   :  { %414 = vrot.lane.b32.xlu0 %v728_v12, %s666_s10 }
 0x125   :  { %v263_v35 = vpop.permute.xlu1 %262  ;;  %v304_v36 = vpop.permute.xlu2 %303 }
 0x126   :  { %v198_v37 = vpop.permute.xlu0 %197  ;;  %v266_v53 = vmul.f32 %v263_v35, %v850_v28  ;;  %v307_v55 = vmul.f32 %v304_v36, %v870_v43  ;;  %v357_v35 = vmul.f32 %v890_v60, %v750_v14 }
 0x127   :  { %v201_v39 = vmul.f32 %v198_v37, %v845_v27 }
 0x129   :  { %v203_v41 = vadd.f32 %v201_v39, %v168_v38 }
 0x12b   :  { %v244_v44 = vadd.f32 %v242_v40, %v203_v41  ;;  %433 = vrot.lane.b32.xlu2 %v816_v21, %s666_s10  ;;  %431 = vrot.lane.b32.xlu1 %v758_v15, %s666_s10 }
 0x12c   :  { %425 = vrot.lane.b32.xlu0 %v800_v18, %s666_s10 }
 0x12d   :  { %v288_v46 = vpop.permute.xlu1 %287  ;;  %v329_v48 = vpop.permute.xlu2 %328  ;;  %v285_v49 = vadd.f32 %v283_v42, %v244_v44 }
 0x12e   :  { %v222_v50 = vpop.permute.xlu0 %221  ;;  %v291_v0 = vmul.f32 %v288_v46, %v870_v43  ;;  %v332_v2 = vmul.f32 %v329_v48, %v875_v47 }
 0x12f   :  { %v225_v52 = vmul.f32 %v222_v50, %v845_v27 }
 0x131   :  { %v227_v54 = vadd.f32 %v225_v52, %v186_v51  ;;  %v361_v52 = vmul.f32 %v890_v60, %v758_v15 }
 0x133   :  { %v268_v56 = vadd.f32 %v266_v53, %v227_v54  ;;  %447 = vrot.lane.b32.xlu2 %v768_v17, %s666_s10  ;;  %441 = vrot.lane.b32.xlu1 %v808_v19, %s666_s10 }
 0x134   :  { %439 = vrot.lane.b32.xlu0 %v760_v16, %s666_s10 }
 0x135   :  { %v337_v57 = vpop.permute.xlu1 %336  ;;  %v399_v58 = vpop.permute.xlu2 %398  ;;  %v309_v45 = vadd.f32 %v307_v55, %v268_v56 }
 0x136   :  { %v247_v59 = vpop.permute.xlu0 %246  ;;  %v340_v8 = vmul.f32 %v337_v57, %v875_v47  ;;  %v402_v24 = vmul.f32 %v399_v58, %v895_v62 }
 0x137   :  { %v250_v63 = vmul.f32 %v247_v59, %v850_v28 }
 0x139   :  { %v252_v1 = vadd.f32 %v250_v63, %v892_v61 }
 0x13b   :  { %v293_v3 = vadd.f32 %v291_v0, %v252_v1  ;;  %457 = vrot.lane.b32.xlu2 %v730_v13, %s667_s11  ;;  %455 = vrot.lane.b32.xlu1 %v728_v12, %s667_s11 }
 0x13c   :  { %449 = vrot.lane.b32.xlu0 %v824_v23, %s666_s10 }
 0x13d   :  { %v383_v4 = vpop.permute.xlu1 %382  ;;  %v960_v5 = vpop.permute.xlu2 %172  ;;  %v334_v6 = vadd.f32 %v332_v2, %v293_v3 }
 0x13e   :  { %v296_v7 = vpop.permute.xlu0 %295  ;;  %v386_v37 = vmul.f32 %v383_v4, %v895_v62 }
 0x13f   :  { %v299_v61 = vmul.f32 %v296_v7, %v870_v43  ;;  %v363_v57 = vadd.f32 %v361_v52, %v334_v6 }
 0x141   :  { %v301_v9 = vadd.f32 %v299_v61, %v260_v34 }
 0x143   :  { %v342_v10 = vadd.f32 %v340_v8, %v301_v9  ;;  %472 = vrot.lane.b32.xlu2 %v758_v15, %s667_s11  ;;  %466 = vrot.lane.b32.xlu1 %v800_v18, %s667_s11 }
 0x144   :  { %464 = vrot.lane.b32.xlu0 %v750_v14, %s667_s11 }
 0x145   :  { %v167_v29 = vpop.permute.xlu1 %166  ;;  %v216_v30 = vpop.permute.xlu2 %215  ;;  %v367_v31 = vadd.f32 %v365_v22, %v342_v10 }
 0x146   :  { %v321_v32 = vpop.permute.xlu0 %320  ;;  %v218_v42 = vmul.f32 %v216_v30, %v845_v27  ;;  %v169_v54 = vmul.f32 %v167_v29, %v842_v26 }
 0x147   :  { %v324_v33 = vmul.f32 %v321_v32, %v875_v47  ;;  %v974_v34 = vadd.f32 %v402_v24, %v367_v31  ;;  %v175_v24 = vmul.f32 %v960_v5, %v842_v26 }
 0x149   :  { %v326_v36 = vadd.f32 %v324_v33, %v285_v49 }
 0x14b   :  { %v359_v38 = vadd.f32 %v357_v35, %v326_v36  ;;  %482 = vrot.lane.b32.xlu2 %v808_v19, %s667_s11  ;;  %480 = vrot.lane.b32.xlu1 %v760_v16, %s667_s11 }
 0x14c   :  { %474 = vrot.lane.b32.xlu0 %v816_v21, %s667_s11 }
 0x14d   :  { %v179_v39 = vpop.permute.xlu1 %178  ;;  %v241_v40 = vpop.permute.xlu2 %240  ;;  %v985_v41 = vadd.f32 %v386_v37, %v359_v38 }
 0x14e   :  { %v181_v44 = vmul.f32 %v179_v39, %v842_v26  ;;  %v345_v46 = vpop.permute.xlu0 %344 }
 0x14f   :  { %v348_v48 = vmul.f32 %v345_v46, %v875_v47 }
 0x150   :  { %v220_v49 = vadd.f32 %v218_v42, %v181_v44 }
 0x151   :  { %v990_v50 = vadd.f32 %v348_v48, %v309_v45  ;;  %v243_v45 = vmul.f32 %v241_v40, %v850_v28  ;;  %v1044_v48 = vperm.slane %v835_v25, 7 }
 0x153   :  { %505 = vrot.lane.b32.xlu2 %v750_v14, %s668_s12  ;;  %498 = vrot.lane.b32.xlu1 %v730_v13, %s668_s12 }
 0x154   :  { %496 = vrot.lane.b32.xlu0 %v728_v12, %s668_s12 }
 0x155   :  { %v200_v51 = vpop.permute.xlu1 %199  ;;  %v265_v53 = vpop.permute.xlu2 %264 }
 0x156   :  { %v202_v55 = vmul.f32 %v200_v51, %v845_v27  ;;  %v391_v56 = vpop.permute.xlu0 %390  ;;  %v267_v7 = vmul.f32 %v265_v53, %v850_v28 }
 0x157   :  { %v394_v58 = vmul.f32 %v391_v56, %v895_v62 }
 0x158   :  { %v204_v59 = vadd.f32 %v202_v55, %v169_v54 }
 0x159   :  { %v1004_v63 = vadd.f32 %v394_v58, %v363_v57 }
 0x15a   :  { %v245_v0 = vadd.f32 %v243_v45, %v204_v59  ;;  %v370_v59 = vmul.f32 %v890_v60, %v824_v23 }
 0x15b   :  { %515 = vrot.lane.b32.xlu2 %v816_v21, %s668_s12  ;;  %513 = vrot.lane.b32.xlu1 %v758_v15, %s668_s12 }
 0x15c   :  { %507 = vrot.lane.b32.xlu0 %v800_v18, %s668_s12 }
 0x15d   :  { %v290_v1 = vpop.permute.xlu2 %289  ;;  %v224_v2 = vpop.permute.xlu1 %223 }
 0x15e   :  { %v226_v3 = vmul.f32 %v224_v2, %v845_v27  ;;  %v185_v4 = vpop.permute.xlu0 %184 }
 0x15f   :  { %v187_v6 = vmul.f32 %v185_v4, %v842_v26 }
 0x161   :  { %v228_v61 = vadd.f32 %v226_v3, %v187_v6  ;;  %v362_v6 = vmul.f32 %v890_v60, %v816_v21 }
 0x163   :  { %537 = vrot.lane.b32.xlu2 %v728_v12, %s669_s13  ;;  %523 = vrot.lane.b32.xlu1 %v808_v19, %s668_s12  ;;  %v269_v8 = vadd.f32 %v267_v7, %v228_v61  ;;  %v292_v12 = vmul.f32 %v290_v1, %v870_v43 }
 0x164   :  { %521 = vrot.lane.b32.xlu0 %v760_v16, %s668_s12 }
 0x165   :  { %v339_v9 = vpop.permute.xlu2 %338  ;;  %v249_v10 = vpop.permute.xlu1 %248 }
 0x166   :  { %v208_v22 = vpop.permute.xlu0 %207  ;;  %v251_v30 = vmul.f32 %v249_v10, %v850_v28  ;;  %v341_v38 = vmul.f32 %v339_v9, %v875_v47  ;;  %v369_v9 = vmul.f32 %v890_v60, %v768_v17 }
 0x167   :  { %v210_v29 = vmul.f32 %v208_v22, %v845_v27 }
 0x169   :  { %v212_v31 = vadd.f32 %v210_v29, %v175_v24 }
 0x16b   :  { %v253_v32 = vadd.f32 %v251_v30, %v212_v31  ;;  %548 = vrot.lane.b32.xlu2 %v800_v18, %s669_s13  ;;  %546 = vrot.lane.b32.xlu1 %v750_v14, %s669_s13 }
 0x16c   :  { %539 = vrot.lane.b32.xlu0 %v730_v13, %s669_s13 }
 0x16d   :  { %v385_v33 = vpop.permute.xlu2 %384  ;;  %v298_v35 = vpop.permute.xlu1 %297  ;;  %v294_v26 = vadd.f32 %v292_v12, %v253_v32 }
 0x16e   :  { %v257_v5 = vpop.permute.xlu0 %256  ;;  %v300_v36 = vmul.f32 %v298_v35, %v870_v43 }
 0x16f   :  { %v259_v27 = vmul.f32 %v257_v5, %v850_v28 }
 0x171   :  { %v261_v37 = vadd.f32 %v259_v27, %v220_v49 }
 0x173   :  { %v302_v39 = vadd.f32 %v300_v36, %v261_v37  ;;  %562 = vrot.lane.b32.xlu2 %v760_v16, %s669_s13  ;;  %556 = vrot.lane.b32.xlu1 %v816_v21, %s669_s13  ;;  %v387_v16 = vmul.f32 %v385_v33, %v895_v62  ;;  %v371_v21 = vadd.f32 %v369_v9, %v990_v50 }
 0x174   :  { %554 = vrot.lane.b32.xlu0 %v758_v15, %s669_s13  ;;  %v358_v15 = vmul.f32 %v890_v60, %v800_v18 }
 0x175   :  { %v409_v13 = vpop.permute.xlu2 %408  ;;  %v323_v14 = vpop.permute.xlu1 %322  ;;  %v343_v40 = vadd.f32 %v341_v38, %v302_v39 }
 0x176   :  { %v282_v42 = vpop.permute.xlu0 %281  ;;  %v325_v44 = vmul.f32 %v323_v14, %v875_v47 }
 0x177   :  { %v284_v28 = vmul.f32 %v282_v42, %v870_v43 }
 0x179   :  { %v286_v46 = vadd.f32 %v284_v28, %v245_v0 }
 0x17b   :  { %v327_v49 = vadd.f32 %v325_v44, %v286_v46  ;;  %490 = vrot.lane.b32.xlu2 %v824_v23, %s667_s11  ;;  %488 = vrot.lane.b32.xlu1 %v768_v17, %s667_s11 }
 0x17c   :  { %564 = vrot.lane.b32.xlu0 %v808_v19, %s669_s13 }
 0x17d   :  { %v424_v51 = vpop.permute.xlu2 %423  ;;  %v347_v52 = vpop.permute.xlu1 %346  ;;  %v360_v53 = vadd.f32 %v358_v15, %v327_v49 }
 0x17e   :  { %v427_v25 = vmul.f32 %v424_v51, %v1044_v48  ;;  %v306_v54 = vpop.permute.xlu0 %305  ;;  %v349_v58 = vmul.f32 %v347_v52, %v875_v47 }
 0x17f   :  { %v308_v55 = vmul.f32 %v306_v54, %v870_v43  ;;  %v389_v56 = vadd.f32 %v387_v16, %v360_v53  ;;  %v411_v43 = vmul.f32 %v409_v13, %v895_v62 }
 0x180   :  { %v1058_v57 = vadd.f32 %v427_v25, %v985_v41 }
 0x181   :  { %v310_v18 = vadd.f32 %v308_v55, %v269_v8 }
 0x183   :  { %v351_v45 = vadd.f32 %v349_v58, %v310_v18  ;;  %570 = vrot.lane.b32.xlu2 %v768_v17, %s669_s13  ;;  %531 = vrot.lane.b32.xlu1 %v824_v23, %s668_s12 }
 0x184   :  { %529 = vrot.lane.b32.xlu0 %v768_v17, %s668_s12 }
 0x185   :  { %v434_v41 = vpop.permute.xlu2 %433  ;;  %v393_v0 = vpop.permute.xlu1 %392  ;;  %v372_v1 = vadd.f32 %v370_v59, %v351_v45 }
 0x186   :  { %v331_v2 = vpop.permute.xlu0 %330  ;;  %v395_v61 = vmul.f32 %v393_v0, %v895_v62  ;;  %v436_v10 = vmul.f32 %v434_v41, %v1044_v48 }
 0x187   :  { %v333_v3 = vmul.f32 %v331_v2, %v875_v47  ;;  %v413_v4 = vadd.f32 %v411_v43, %v372_v1  ;;  %v366_v47 = vmul.f32 %v890_v60, %v808_v19 }
 0x189   :  { %v335_v7 = vadd.f32 %v333_v3, %v294_v26  ;;  %v368_v12 = vadd.f32 %v366_v47, %v343_v40 }
 0x18b   :  { %v364_v8 = vadd.f32 %v362_v6, %v335_v7 }
 0x18c   :  { %572 = vrot.lane.b32.xlu0 %v824_v23, %s669_s13 }
 0x18d   :  { %v448_v22 = vpop.permute.xlu2 %447  ;;  %v407_v24 = vpop.permute.xlu1 %406  ;;  %v397_v29 = vadd.f32 %v395_v61, %v364_v8 }
 0x18e   :  { %v410_v30 = vmul.f32 %v407_v24, %v895_v62  ;;  %v401_v31 = vpop.permute.xlu0 %400  ;;  %v451_v17 = vmul.f32 %v448_v22, %v1044_v48 }
 0x18f   :  { %v403_v32 = vmul.f32 %v401_v31, %v895_v62  ;;  %v1084_v23 = vadd.f32 %v436_v10, %v397_v29 }
 0x190   :  { %v412_v33 = vadd.f32 %v410_v30, %v371_v21 }
 0x191   :  { %v405_v35 = vadd.f32 %v403_v32, %v368_v12 }
 0x192   :  { %v1087_v26 = vadd.f32 %v451_v17, %v412_v33 }
 0x195   :  { %v417_v5 = vpop.permute.xlu1 %416  ;;  %v458_v27 = vpop.permute.xlu2 %457 }
 0x196   :  { %v420_v19 = vmul.f32 %v1044_v48, %v417_v5  ;;  %v415_v60 = vpop.permute.xlu0 %414 }
 0x197   :  { %v419_v50 = vmul.f32 %v1044_v48, %v415_v60 }
 0x198   :  { %v422_v36 = vadd.f32 %v420_v19, %v912_v20 }
 0x199   :  { %v421_v37 = vadd.f32 %v419_v50, %v910_v11 }
 0x19d   :  { %v432_v62 = vpop.permute.xlu1 %431  ;;  %v1098_v40 = vpop.permute.xlu2 %472 }
 0x19e   :  { %v435_v38 = vmul.f32 %v432_v62, %v1044_v48  ;;  %v426_v39 = vpop.permute.xlu0 %425 }
 0x19f   :  { %v428_v13 = vmul.f32 %v426_v39, %v1044_v48 }
 0x1a0   :  { %v1096_v14 = vadd.f32 %v435_v38, %v1004_v63 }
 0x1a1   :  { %v430_v42 = vadd.f32 %v428_v13, %v389_v56 }
 0x1a5   :  { %v442_v28 = vpop.permute.xlu1 %441  ;;  %v1105_v15 = vpop.permute.xlu2 %482 }
 0x1a6   :  { %v444_v44 = vmul.f32 %v442_v28, %v1044_v48  ;;  %v440_v46 = vpop.permute.xlu0 %439 }
 0x1a7   :  { %v443_v20 = vmul.f32 %v440_v46, %v1044_v48 }
 0x1a8   :  { %v1102_v49 = vadd.f32 %v444_v44, %v405_v35 }
 0x1a9   :  { %v445_v11 = vadd.f32 %v443_v20, %v974_v34  ;;  %v23_v34 = vld [vmem:[%s1166_s1 + $0x8] sm:$0xff] }
 0x1aa   :  { %v1113_v0 = vperm.slane %v23_v34, 0  ;;  %v1115_v1 = vperm.slane %v23_v34, 1  ;;  %v1122_v10 = vperm.slane %v23_v34, 2 }
 0x1ac   :  { %v461_v30 = vmul.f32 %v1113_v0, %v458_v27  ;;  %v476_v46 = vmul.f32 %v1098_v40, %v1113_v0 }
 0x1ad   :  { %v456_v16 = vpop.permute.xlu1 %455  ;;  %v506_v53 = vpop.permute.xlu2 %505 }
 0x1ae   :  { %v450_v51 = vpop.permute.xlu0 %449  ;;  %v460_v2 = vmul.f32 %v1113_v0, %v456_v16  ;;  %v509_v32 = vmul.f32 %v506_v53, %v1115_v1  ;;  %v463_v19 = vadd.f32 %v461_v30, %v422_v36 }
 0x1af   :  { %v452_v63 = vmul.f32 %v450_v51, %v1044_v48 }
 0x1b0   :  { %v462_v9 = vadd.f32 %v460_v2, %v421_v37 }
 0x1b1   :  { %v1108_v52 = vadd.f32 %v452_v63, %v413_v4 }
 0x1b5   :  { %v467_v25 = vpop.permute.xlu1 %466  ;;  %v516_v58 = vpop.permute.xlu2 %515 }
 0x1b6   :  { %v465_v54 = vpop.permute.xlu0 %464  ;;  %v469_v3 = vmul.f32 %v467_v25, %v1113_v0 }
 0x1b7   :  { %v468_v6 = vmul.f32 %v465_v54, %v1113_v0 }
 0x1b8   :  { %v471_v24 = vadd.f32 %v469_v3, %v430_v42 }
 0x1b9   :  { %v470_v47 = vadd.f32 %v468_v6, %v1058_v57 }
 0x1bb   :  { %v511_v62 = vadd.f32 %v509_v32, %v470_v47 }
 0x1bd   :  { %v481_v55 = vpop.permute.xlu1 %480  ;;  %v538_v59 = vpop.permute.xlu2 %537 }
 0x1be   :  { %v475_v56 = vpop.permute.xlu0 %474  ;;  %v484_v22 = vmul.f32 %v481_v55, %v1113_v0  ;;  %v542_v17 = vmul.f32 %v1122_v10, %v538_v59  ;;  %v478_v59 = vadd.f32 %v476_v46, %v1096_v14 }
 0x1bf   :  { %v477_v35 = vmul.f32 %v475_v56, %v1113_v0  ;;  %v518_v56 = vmul.f32 %v516_v58, %v1115_v1 }
 0x1c0   :  { %v486_v33 = vadd.f32 %v484_v22, %v445_v11 }
 0x1c1   :  { %v479_v36 = vadd.f32 %v477_v35, %v1084_v23 }
 0x1c3   :  { %v520_v34 = vadd.f32 %v518_v56, %v479_v36 }
 0x1c5   :  { %v499_v18 = vpop.permute.xlu1 %498  ;;  %v549_v48 = vpop.permute.xlu2 %548 }
 0x1c6   :  { %v497_v45 = vpop.permute.xlu0 %496  ;;  %v502_v31 = vmul.f32 %v1115_v1, %v499_v18  ;;  %v551_v5 = vmul.f32 %v549_v48, %v1122_v10 }
 0x1c7   :  { %v501_v7 = vmul.f32 %v1115_v1, %v497_v45 }
 0x1c8   :  { %v504_v39 = vadd.f32 %v502_v31, %v463_v19 }
 0x1c9   :  { %v503_v29 = vadd.f32 %v501_v7, %v462_v9 }
 0x1cb   :  { %v544_v50 = vadd.f32 %v542_v17, %v503_v29 }
 0x1cd   :  { %v514_v43 = vpop.permute.xlu1 %513  ;;  %v563_v60 = vpop.permute.xlu2 %562  ;;  %v578_v11 = vmul.f32 %v544_v50, %v544_v50 }
 0x1ce   :  { %v508_v41 = vpop.permute.xlu0 %507  ;;  %v566_v28 = vmul.f32 %v563_v60, %v1122_v10  ;;  %v517_v53 = vmul.f32 %v514_v43, %v1115_v1 }
 0x1cf   :  { %v510_v8 = vmul.f32 %v508_v41, %v1115_v1 }
 0x1d0   :  { %v519_v2 = vadd.f32 %v517_v53, %v478_v59 }
 0x1d1   :  { %v512_v12 = vadd.f32 %v510_v8, %v471_v24 }
 0x1d3   :  { %v553_v13 = vadd.f32 %v551_v5, %v512_v12 }
 0x1d5   :  { %v524_v4 = vpop.permute.xlu1 %523  ;;  %v581_v25 = vmul.f32 %v553_v13, %v553_v13  ;;  %v491_v9 = vpop.permute.xlu2 %490 }
 0x1d6   :  { %v522_v61 = vpop.permute.xlu0 %521  ;;  %v526_v58 = vmul.f32 %v524_v4, %v1115_v1 }
 0x1d7   :  { %v525_v21 = vmul.f32 %v522_v61, %v1115_v1  ;;  %v485_v61 = vmul.f32 %v1105_v15, %v1113_v0 }
 0x1d9   :  { %v527_v37 = vadd.f32 %v525_v21, %v486_v33  ;;  %v487_v14 = vadd.f32 %v485_v61, %v1102_v49 }
 0x1db   :  { %v568_v16 = vadd.f32 %v566_v28, %v527_v37  ;;  %v528_v29 = vadd.f32 %v526_v58, %v487_v14 }
 0x1dd   :  { %v547_v57 = vpop.permute.xlu1 %546  ;;  %v571_v35 = vpop.permute.xlu2 %570 }
 0x1de   :  { %v550_v27 = vmul.f32 %v547_v57, %v1122_v10  ;;  %v540_v38 = vpop.permute.xlu0 %539  ;;  %v574_v37 = vmul.f32 %v571_v35, %v1122_v10 }
 0x1df   :  { %v543_v42 = vmul.f32 %v1122_v10, %v540_v38 }
 0x1e0   :  { %v552_v44 = vadd.f32 %v550_v27, %v511_v62 }
 0x1e1   :  { %v545_v20 = vadd.f32 %v543_v42, %v504_v39 }
 0x1e2   :  { %v580_v51 = vmul.f32 %v552_v44, %v552_v44  ;;  %v582_v63 = vmul.f32 %v552_v44, %v544_v50  ;;  %v493_v50 = vmul.f32 %v491_v9, %v1113_v0 }
 0x1e3   :  { %v579_v54 = vmul.f32 %v545_v20, %v545_v20  ;;  %v583_v55 = vmul.f32 %v553_v13, %v545_v20 }
 0x1e4   :  { %v586_v18 = vsub.f32 %v568_v16, %v580_v51  ;;  %v600_v45 = vadd.f32 %v580_v51, %v578_v11  ;;  %v495_v13 = vadd.f32 %v493_v50, %v1108_v52  ;;  %v590_v42 = vmul.f32 2.0, %v582_v63 }
 0x1e5   :  { %v601_v41 = vadd.f32 %v581_v25, %v579_v54  ;;  %v557_v40 = vpop.permute.xlu1 %556  ;;  %v591_v16 = vmul.f32 2.0, %v583_v55 }
 0x1e6   :  { %v559_v23 = vmul.f32 %v557_v40, %v1122_v10  ;;  %v555_v48 = vpop.permute.xlu0 %554  ;;  %v602_v21 = vadd.f32 0.0001, %v600_v45  ;;  %v592_v20 = vadd.f32 0.0001, %v590_v42 }
 0x1e7   :  { %v558_v3 = vmul.f32 %v555_v48, %v1122_v10  ;;  %v603_v5 = vadd.f32 0.0001, %v601_v41  ;;  %v593_v56 = vadd.f32 0.0001, %v591_v16 }
 0x1e8   :  { %v561_v6 = vadd.f32 %v559_v23, %v520_v34 }
 0x1e9   :  { %v560_v43 = vadd.f32 %v558_v3, %v519_v2 }
 0x1ea   :  { %v585_v7 = vsub.f32 %v561_v6, %v579_v54 }
 0x1eb   :  { %v584_v8 = vsub.f32 %v560_v43, %v578_v11 }
 0x1ed   :  { %v604_v22 = vadd.f32 %v586_v18, %v584_v8  ;;  %v489_v24 = vpop.permute.xlu1 %488 }
 0x1ee   :  { %v565_v47 = vpop.permute.xlu0 %564  ;;  %v492_v17 = vmul.f32 %v489_v24, %v1113_v0 }
 0x1ef   :  { %v606_v30 = vadd.f32 0.0009, %v604_v22  ;;  %v567_v31 = vmul.f32 %v565_v47, %v1122_v10 }
 0x1f0   :  { %v494_v19 = vadd.f32 %v492_v17, %v1087_v26 }
 0x1f1   :  { %v608_v12 = vmul.f32 %v606_v30, %v602_v21  ;;  %v569_v32 = vadd.f32 %v567_v31, %v528_v29 }
 0x1f3   :  { %v587_v33 = vsub.f32 %v569_v32, %v581_v25  ;;  %656 = vrcp.f32 %v608_v12 }
 0x1f5   :  { %v605_v15 = vadd.f32 %v587_v33, %v585_v7  ;;  %v532_v57 = vpop.permute.xlu1 %531 }
 0x1f6   :  { %v530_v4 = vpop.permute.xlu0 %529  ;;  %v534_v38 = vmul.f32 %v532_v57, %v1115_v1 }
 0x1f7   :  { %v607_v49 = vadd.f32 0.0009, %v605_v15  ;;  %v533_v60 = vmul.f32 %v530_v4, %v1115_v1 }
 0x1f8   :  { %v536_v26 = vadd.f32 %v534_v38, %v495_v13 }
 0x1f9   :  { %v609_v62 = vmul.f32 %v607_v49, %v603_v5  ;;  %v535_v27 = vadd.f32 %v533_v60, %v494_v19  ;;  %v657_v25 = vpop.eup %656 }
 0x1fb   :  { %v576_v39 = vadd.f32 %v574_v37, %v535_v27  ;;  %658 = vrcp.f32 %v609_v62 }
 0x1fd   :  { %v588_v28 = vsub.f32 %v576_v39, %v582_v63  ;;  %v655_v63 = vld [vmem:[%s1167_s2] ss:$0 sm:$0xff] }
 0x1fe   :  { %v573_v44 = vpop.permute.xlu0 %572 }
 0x1ff   :  { %v594_v46 = vmul.f32 2.0, %v588_v28  ;;  %v575_v36 = vmul.f32 %v573_v44, %v1122_v10 }
 0x201   :  { %v596_v11 = vadd.f32 0.0009, %v594_v46  ;;  %v577_v0 = vadd.f32 %v575_v36, %v536_v26  ;;  %v659_v45 = vpop.eup %658 }
 0x203   :  { %v598_v51 = vmul.f32 %v596_v11, %v592_v20  ;;  %v589_v53 = vsub.f32 %v577_v0, %v583_v55 }
 0x205   :  { %v612_v1 = vmul.f32 %v657_v25, %v598_v51  ;;  %v595_v54 = vmul.f32 2.0, %v589_v53 }
 0x207   :  { %v597_v52 = vadd.f32 0.0009, %v595_v54  ;;  %v617_v10 = vmul.f32 %v655_v63, %v612_v1 }
 0x209   :  { %v599_v18 = vmul.f32 %v597_v52, %v593_v56 }
 0x20b   :  { %v613_v59 = vmul.f32 %v659_v45, %v599_v18 }
 0x20d   :  { %v618_v41 = vmul.f32 %v655_v63, %v613_v59 }
 0x20f   :  { %v619_v40 = vadd.f32 %v618_v41, %v617_v10 }
 0x211   :  { %v620_v34 = vrot.slane %v619_v40, 4 }
 0x213   :  { %v621_v23 = vadd.f32 %v620_v34, %v619_v40 }
 0x215   :  { %v622_v48 = vrot.slane %v621_v23, 2 }
 0x217   :  { %v623_v55 = vadd.f32 %v622_v48, %v621_v23 }
 0x219   :  { %v624_v2 = vrot.slane %v623_v55, 1 }
 0x21b   :  { %v625_v3 = vadd.f32 %v624_v2, %v623_v55 }
 0x21d   :  { %v627_v6 = vsel %vm626_vm1, %v625_v3, 0.0 }
 0x21e   :  { %628 = vst [vmem:[%s1168_s5] sm:$0xff] %v627_v6 }

</bundles_post_ra>
